<compile_context>
chip_gen: v5e
topology: v5e:2x2
jax: 0.10.0
libtpu: 0.0.40
codegen_flags: <defaults>
</compile_context>

<pallas_src>
import functools

import jax
import jax.numpy as jnp
from jax.experimental import pallas as pl
from jax.experimental.pallas import tpu as pltpu

# dtype itemsize -> native sublane multiple (packed dtypes need taller tiles)
_SUBLANE_BY_ITEMSIZE = {4: 8, 2: 16, 1: 32}

# ~2 MiB tiles: big enough to amortize per-grid-step overhead on all of
# v5e / v6e / v7x, small enough that 4 double-buffered copies fit every
# generation's default scoped VMEM.
_TARGET_TILE_BYTES = 2 * 1024 * 1024

# Candidate lane-dense slab widths (largest first), all multiples of 128.
_SLAB_WIDTHS = (16384, 8192, 4096, 2048, 1024, 512, 256, 128)


# ----------------------------- Pallas kernel --------------------------------
def _copy_kernel(x_ref, o_ref):
    # Straight lane-dense copy of the current (blk_rows, cols) tile.
    o_ref[...] = x_ref[...]


def _pallas_copy_2d(x2d):
    """Stream-copy a 2-D array through VMEM with multi-MiB row tiles."""
    rows, cols = x2d.shape
    itemsize = x2d.dtype.itemsize
    sub = _SUBLANE_BY_ITEMSIZE.get(itemsize, 8)

    if rows <= sub:
        # Single full-extent block (block dims == array dims is always legal).
        blk_rows = rows
    else:
        # Rows per tile targeting ~_TARGET_TILE_BYTES, sublane-aligned,
        # clamped to the sublane-aligned portion of rows (Pallas masks the
        # ragged edge block produced by the cdiv grid).
        blk_rows = _TARGET_TILE_BYTES // max(1, cols * itemsize)
        blk_rows = max(sub, (blk_rows // sub) * sub)
        blk_rows = min(blk_rows, (rows // sub) * sub)

    grid = (pl.cdiv(rows, blk_rows),)
    nbytes = rows * cols * itemsize

    return pl.pallas_call(
        _copy_kernel,
        out_shape=jax.ShapeDtypeStruct((rows, cols), x2d.dtype),
        grid=grid,
        in_specs=[pl.BlockSpec((blk_rows, cols), lambda i: (i, 0))],
        out_specs=pl.BlockSpec((blk_rows, cols), lambda i: (i, 0)),
        compiler_params=pltpu.CompilerParams(
            dimension_semantics=("parallel",)),
        cost_estimate=pl.CostEstimate(
            flops=0, transcendentals=0, bytes_accessed=2 * nbytes),
    )(x2d)


# ------------------------------ wrapper --------------------------------------
def identity_embedding(x, force_copy=False):
    """IdentityEmbedding.forward: returns x.unsqueeze(-1) (i.e. x[..., None]).

    Default: metadata-only expand_dims (zero bytes moved — no kernel can beat
    that).  With force_copy=True, the data is materialized into a fresh buffer
    by a lane-dense Pallas streaming-copy kernel.
    """
    if not force_copy or x.size == 0:
        return jnp.expand_dims(x, -1)

    orig_shape = x.shape
    n = x.size

    # Element order is irrelevant for an identity copy, so flatten to the
    # widest lane-dense slab (cols a large multiple of 128) the total element
    # count allows; otherwise keep a (rows, last_dim) view (Pallas masks the
    # narrow stores — only hit for tiny / oddly sized inputs).
    cols = None
    for c in _SLAB_WIDTHS:
        if n % c == 0:
            cols = c
            break
    if cols is None:
        cols = orig_shape[-1] if x.ndim >= 1 and orig_shape[-1] > 0 else n

    x2d = x.reshape(-1, cols)
    out2d = _pallas_copy_2d(x2d)

    # unsqueeze(-1): zero-cost metadata reshape outside the kernel.
    return out2d.reshape(*orig_shape, 1)


identity_embedding_jit = jax.jit(identity_embedding,
                                 static_argnames=("force_copy",))


# ------------------------------- reference -----------------------------------
def identity_embedding_ref(x):
    return x[..., None]


# --------------------------------- main ---------------------------------------
if __name__ == "__main__":
    key = jax.random.PRNGKey(0)
    k1, k2, k3 = jax.random.split(key, 3)

    # (batch=2, channels=4, spatial=16x16) f32: flattened to a lane-dense slab.
    x4d = jax.random.normal(k1, (2, 4, 16, 16), jnp.float32)
    out4d = jax.block_until_ready(identity_embedding_jit(x4d, force_copy=True))
    assert out4d.shape == (2, 4, 16, 16, 1), out4d.shape
    assert jnp.array_equal(out4d, identity_embedding_ref(x4d))

    # Narrow feature dim, packed dtype: (batch=32, hidden=8) bf16.
    x2d = jax.random.normal(k2, (32, 8), jnp.bfloat16)
    out2d = jax.block_until_ready(identity_embedding_jit(x2d, force_copy=True))
    assert out2d.shape == (32, 8, 1), out2d.shape
    assert jnp.array_equal(out2d, identity_embedding_ref(x2d))

    # 1-D input not divisible by 128: full-extent fallback block.
    x1d = jax.random.uniform(k3, (8,), jnp.float32)
    out1d = jax.block_until_ready(identity_embedding_jit(x1d, force_copy=True))
    assert out1d.shape == (8, 1), out1d.shape
    assert jnp.array_equal(out1d, identity_embedding_ref(x1d))

    # Default path: metadata-only unsqueeze, no kernel / no HBM traffic.
    outd = jax.block_until_ready(identity_embedding_jit(x4d))
    assert outd.shape == (2, 4, 16, 16, 1), outd.shape
    assert jnp.array_equal(outd, identity_embedding_ref(x4d))

    print("KERNEL_OK")
</pallas_src>

<mosaic_0001>
module attributes {stable_mosaic.version = 11 : i64} {
  func.func @_copy_kernel(%arg0: i32, %arg1: memref<1x2048xf32, #tpu.memory_space<vmem>>, %arg2: memref<1x2048xf32, #tpu.memory_space<vmem>>) attributes {dimension_semantics = [#tpu.dimension_semantics<parallel>], iteration_bounds = array<i64: 1>, scalar_prefetch = 0 : i64, scratch_operands = 0 : i64, tpu.core_type = #tpu.core_type<tc>, window_params = [{transform_indices = @transform_0, window_bounds = array<i64: 1, 2048>}, {transform_indices = @transform_1, window_bounds = array<i64: 1, 2048>}]} {
    %c0 = arith.constant 0 : index
    %c0_0 = arith.constant 0 : index
    %0 = vector.load %arg1[%c0, %c0_0] : memref<1x2048xf32, #tpu.memory_space<vmem>>, vector<1x2048xf32>
    %c0_1 = arith.constant 0 : index
    %c0_2 = arith.constant 0 : index
    %1 = vector.load %arg2[%c0_1, %c0_2] : memref<1x2048xf32, #tpu.memory_space<vmem>>, vector<1x2048xf32>
    tpu.vector_store %arg2[%c0_1, %c0_2], %0 {strides = array<i32>} : memref<1x2048xf32, #tpu.memory_space<vmem>>, vector<1x2048xf32>,
    return
  }
  func.func @transform_0(%arg0: i32) -> (i32, i32) {
    %c0_i32 = arith.constant 0 : i32
    %c0_i32_0 = arith.constant 0 : i32
    return %arg0, %c0_i32 : i32, i32
  }
  func.func @transform_1(%arg0: i32) -> (i32, i32) {
    %c0_i32 = arith.constant 0 : i32
    %c0_i32_0 = arith.constant 0 : i32
    return %arg0, %c0_i32 : i32, i32
  }
}

</mosaic_0001>

<bundles_post_ra>
// kernel: identity_embedding.1
= control target key start
LH: loop header
LB: loop body
LE: loop exit
PB: predicated region body
PF: predicated region fallthrough
CT: control target
= control target key end

     0   :  { %s38_s0 = inlined_call_operand.vmem [shape: f32[1,2048], index: 0, kind: input, shape index: {}]   ;;  %s39_s1 = inlined_call_operand.vmem [shape: f32[1,2048], index: 1, kind: output, shape index: {}]  }
   0x1   :  { %v8_v0 = vld [vmem:[%s38_s0] sm:$0xff]  ;;  %v9_v1 = vld [vmem:[%s38_s0 + $0x8] sm:$0xff] }
   0x2   :  { %10 = vst [vmem:[%s39_s1] sm:$0xff] %v8_v0 }
   0x3   :  { %11 = vst [vmem:[%s39_s1 + $0x8] sm:$0xff] %v9_v1 }

</bundles_post_ra>
